<compile_context>
chip_gen: v5e
topology: v5e:2x2
jax: 0.10.0
libtpu: 0.0.40
codegen_flags: <defaults>
</compile_context>

<pallas_src>
import jax
import jax.numpy as jnp
from jax.experimental import pallas as pl
from jax.experimental.pallas import tpu as pltpu

RGB_PAD = 8  # pad rgb=3 -> 8 sublanes so output stores are full, unmasked vregs


def color_decoder_kernel(z_ref, w1T_ref, b1_ref, w2T_ref, b2_ref, oT_ref):
    """sigmoid(W2p^T @ relu(W1^T @ z^T + b1) + b2), batch on the lane axis."""
    cdt = w1T_ref.dtype
    # [hidden, z_dim] x [tile, z_dim], contracting z_dim on both (NT form):
    # the z transpose is folded into the MXU contraction -> lane-dense [hidden, tile].
    h = jax.lax.dot_general(
        w1T_ref[...], z_ref[...].astype(cdt),
        dimension_numbers=(((1,), (1,)), ((), ())),
        preferred_element_type=jnp.float32)
    h = jnp.maximum(h + b1_ref[...], 0.0)              # f32 bias + ReLU
    # [RGB_PAD, hidden] @ [hidden, tile] -> [RGB_PAD, tile]
    raw = jnp.dot(w2T_ref[...], h.astype(cdt), preferred_element_type=jnp.float32)
    oT_ref[...] = jax.nn.sigmoid(raw + b2_ref[...]).astype(oT_ref.dtype)


def _round_up(x, m):
    return ((x + m - 1) // m) * m


def prepare_params(w1, b1, w2, b2, *, compute_dtype=jnp.bfloat16):
    """One-time weight prep: transpose, rgb-pad 3->8, cast MXU operands. Hoisted
    out of the per-call forward path."""
    _, hidden_dim = w1.shape
    rgb_dim = w2.shape[1]
    w1T = w1.T.astype(compute_dtype)                                   # [hidden, z_dim]
    b1c = b1.astype(jnp.float32).reshape(hidden_dim, 1)                # [hidden, 1]
    w2T = (jnp.zeros((RGB_PAD, hidden_dim), compute_dtype)
           .at[:rgb_dim].set(w2.T.astype(compute_dtype)))              # [8, hidden]
    b2c = (jnp.zeros((RGB_PAD, 1), jnp.float32)
           .at[:rgb_dim, 0].set(b2.astype(jnp.float32)))               # [8, 1]
    return w1T, b1c, w2T, b2c


def _select_batch_tiling(B, per_elem_bytes, tile_b, vmem_budget_bytes):
    b128 = _round_up(B, 128)
    n128 = b128 // 128
    cap = max(1, min(tile_b, vmem_budget_bytes // per_elem_bytes) // 128)
    grid = pl.cdiv(n128, min(cap, n128))
    if grid == 1 and n128 >= 2:
        grid = 2                      # >=2 tiles so both v7x TensorCores get work
    m = pl.cdiv(n128, grid)           # re-derive tile -> minimal tail padding
    return 128 * m, grid, 128 * grid * m


def color_decoder_forward(z_sample, params, *, rgb_dim=3, tile_b=32768,
                          vmem_budget_bytes=24 * 1024 * 1024,
                          return_transposed=False):
    """ColorDecoder forward. z_sample: [B, z_dim]; params from prepare_params.
    Returns [B, rgb_dim] (or [rgb_dim, B] if return_transposed, skipping the
    epilogue transpose for consumers that accept the lane-dense layout)."""
    w1T, b1c, w2T, b2c = params
    B, z_dim = z_sample.shape
    hidden_dim = w1T.shape[0]
    out_dtype = z_sample.dtype
    c_size = jnp.dtype(w1T.dtype).itemsize

    # Approximate per-batch-element VMEM bytes: double-buffered z block
    # (lane-padded to 128), f32 h + its cast copy, raw/out blocks.
    per_elem = (2 * _round_up(z_dim, 128) * jnp.dtype(z_sample.dtype).itemsize
                + hidden_dim * (4 + c_size)
                + RGB_PAD * (4 + 2 * jnp.dtype(out_dtype).itemsize))
    tile, grid, padded_B = _select_batch_tiling(B, per_elem, tile_b,
                                                vmem_budget_bytes)

    z_in = z_sample
    if padded_B != B:
        # Ragged batch: pad rows so no block reads out of bounds.  Batches that
        # are a multiple of the chosen tile skip this extra HBM pass entirely.
        z_in = jnp.pad(z_sample, ((0, padded_B - B), (0, 0)))

    outT = pl.pallas_call(
        color_decoder_kernel,
        out_shape=jax.ShapeDtypeStruct((RGB_PAD, padded_B), out_dtype),
        grid=(grid,),
        in_specs=[
            pl.BlockSpec((tile, z_dim), lambda i: (i, 0)),            # z, native layout
            pl.BlockSpec((hidden_dim, z_dim), lambda i: (0, 0)),      # W1^T resident
            pl.BlockSpec((hidden_dim, 1), lambda i: (0, 0)),          # b1 resident
            pl.BlockSpec((RGB_PAD, hidden_dim), lambda i: (0, 0)),    # W2^T resident
            pl.BlockSpec((RGB_PAD, 1), lambda i: (0, 0)),             # b2 resident
        ],
        out_specs=pl.BlockSpec((RGB_PAD, tile), lambda i: (0, i)),
        compiler_params=pltpu.CompilerParams(
            dimension_semantics=("parallel",),
            vmem_limit_bytes=32 * 1024 * 1024),
    )(z_in, w1T, b1c, w2T, b2c)

    if return_transposed:
        return outT[:rgb_dim, :B]       # [rgb, B], lane-dense, no transpose pass
    return outT[:rgb_dim, :B].T         # [B, rgb], matches the PyTorch module


def init_params(key, z_dim, hidden_dim, rgb_dim=3, dtype=jnp.float32):
    """Deterministic init mimicking nn.Linear's uniform(-1/sqrt(fan_in), +)."""
    k1, k2, k3, k4 = jax.random.split(key, 4)
    lim1 = 1.0 / jnp.sqrt(z_dim)
    lim2 = 1.0 / jnp.sqrt(hidden_dim)
    w1 = jax.random.uniform(k1, (z_dim, hidden_dim), dtype, -lim1, lim1)
    b1 = jax.random.uniform(k2, (hidden_dim,), dtype, -lim1, lim1)
    w2 = jax.random.uniform(k3, (hidden_dim, rgb_dim), dtype, -lim2, lim2)
    b2 = jax.random.uniform(k4, (rgb_dim,), dtype, -lim2, lim2)
    return w1, b1, w2, b2


if __name__ == "__main__":
    key = jax.random.PRNGKey(0)
    k_params, k_z1, k_z2 = jax.random.split(key, 3)

    z_dim, hidden_dim, rgb_dim = 16, 32, 3
    w1, b1, w2, b2 = init_params(k_params, z_dim, hidden_dim, rgb_dim)

    def reference(z):
        h = jnp.maximum(z @ w1 + b1, 0.0)
        return jax.nn.sigmoid(h @ w2 + b2)

    fwd = jax.jit(color_decoder_forward,
                  static_argnames=("rgb_dim", "tile_b", "vmem_budget_bytes",
                                   "return_transposed"))

    # bf16 MXU operands (default), aligned batch -> no pad pass, 2 grid tiles.
    params_bf16 = prepare_params(w1, b1, w2, b2)
    z_a = jax.random.normal(k_z1, (256, z_dim), jnp.float32)
    out_a = jax.block_until_ready(fwd(z_a, params_bf16))
    assert out_a.shape == (256, rgb_dim)
    assert jnp.allclose(out_a, reference(z_a), atol=2e-2, rtol=2e-2)

    # f32 MXU operands, tiny ragged batch -> exercises the pad fallback path.
    params_f32 = prepare_params(w1, b1, w2, b2, compute_dtype=jnp.float32)
    z_b = jax.random.normal(k_z2, (8, z_dim), jnp.float32)
    out_b = jax.block_until_ready(fwd(z_b, params_f32))
    assert out_b.shape == (8, rgb_dim)
    assert jnp.allclose(out_b, reference(z_b), atol=1e-5, rtol=1e-5)

    print("KERNEL_OK")
</pallas_src>

<mosaic_0001>
module attributes {stable_mosaic.version = 11 : i64} {
  func.func @color_decoder_kernel(%arg0: i32, %arg1: memref<128x16xf32, #tpu.memory_space<vmem>>, %arg2: memref<32x16xbf16, #tpu.memory_space<vmem>>, %arg3: memref<32x1xf32, #tpu.memory_space<vmem>>, %arg4: memref<8x32xbf16, #tpu.memory_space<vmem>>, %arg5: memref<8x1xf32, #tpu.memory_space<vmem>>, %arg6: memref<8x128xf32, #tpu.memory_space<vmem>>) attributes {dimension_semantics = [#tpu.dimension_semantics<parallel>], iteration_bounds = array<i64: 2>, scalar_prefetch = 0 : i64, scratch_operands = 0 : i64, tpu.core_type = #tpu.core_type<tc>, window_params = [{transform_indices = @transform_0, window_bounds = array<i64: 128, 16>}, {pipeline_mode = #tpu.pipeline_mode<synchronous>, transform_indices = @transform_1, window_bounds = array<i64: 32, 16>}, {pipeline_mode = #tpu.pipeline_mode<synchronous>, transform_indices = @transform_2, window_bounds = array<i64: 32, 1>}, {pipeline_mode = #tpu.pipeline_mode<synchronous>, transform_indices = @transform_3, window_bounds = array<i64: 8, 32>}, {pipeline_mode = #tpu.pipeline_mode<synchronous>, transform_indices = @transform_4, window_bounds = array<i64: 8, 1>}, {transform_indices = @transform_5, window_bounds = array<i64: 8, 128>}]} {
    %c0 = arith.constant 0 : index
    %c0_0 = arith.constant 0 : index
    %0 = vector.load %arg2[%c0, %c0_0] : memref<32x16xbf16, #tpu.memory_space<vmem>>, vector<32x16xbf16>
    %c0_1 = arith.constant 0 : index
    %c0_2 = arith.constant 0 : index
    %1 = vector.load %arg1[%c0_1, %c0_2] : memref<128x16xf32, #tpu.memory_space<vmem>>, vector<128x16xf32>
    %2 = arith.truncf %1 : vector<128x16xf32> to vector<128x16xbf16>
    %cst = arith.constant dense<0.000000e+00> : vector<32x128xf32>
    %3 = tpu.matmul %0, %2, %cst {dimension_numbers = #tpu.dot_dimension_numbers<[1], [1], [0], [0], [0, 0, 1, 0], [], []>} : vector<32x16xbf16>, vector<128x16xbf16>, vector<32x128xf32> -> vector<32x128xf32>
    %c0_3 = arith.constant 0 : index
    %c0_4 = arith.constant 0 : index
    %4 = vector.load %arg3[%c0_3, %c0_4] : memref<32x1xf32, #tpu.memory_space<vmem>>, vector<32x1xf32>
    %5 = vector.broadcast %4 : vector<32x1xf32> to vector<32x128xf32>
    %6 = arith.addf %3, %5 : vector<32x128xf32>
    %cst_5 = arith.constant 0.000000e+00 : f32
    %7 = vector.broadcast %cst_5 : f32 to vector<32x128xf32>
    %8 = arith.maximumf %6, %7 : vector<32x128xf32>
    %c0_6 = arith.constant 0 : index
    %c0_7 = arith.constant 0 : index
    %9 = vector.load %arg4[%c0_6, %c0_7] : memref<8x32xbf16, #tpu.memory_space<vmem>>, vector<8x32xbf16>
    %10 = arith.truncf %8 : vector<32x128xf32> to vector<32x128xbf16>
    %cst_8 = arith.constant dense<0.000000e+00> : vector<8x128xf32>
    %11 = tpu.matmul %9, %10, %cst_8 {dimension_numbers = #tpu.dot_dimension_numbers<[1], [0], [0], [1], [0, 0, 1, 1], [], []>} : vector<8x32xbf16>, vector<32x128xbf16>, vector<8x128xf32> -> vector<8x128xf32>
    %c0_9 = arith.constant 0 : index
    %c0_10 = arith.constant 0 : index
    %12 = vector.load %arg5[%c0_9, %c0_10] : memref<8x1xf32, #tpu.memory_space<vmem>>, vector<8x1xf32>
    %13 = vector.broadcast %12 : vector<8x1xf32> to vector<8x128xf32>
    %14 = arith.addf %11, %13 : vector<8x128xf32>
    %15 = arith.negf %14 : vector<8x128xf32>
    %16 = math.exp %15 : vector<8x128xf32>
    %cst_11 = arith.constant 1.000000e+00 : f32
    %17 = vector.broadcast %cst_11 : f32 to vector<8x128xf32>
    %18 = arith.addf %17, %16 : vector<8x128xf32>
    %19 = arith.divf %17, %18 : vector<8x128xf32>
    %c0_12 = arith.constant 0 : index
    %c0_13 = arith.constant 0 : index
    %20 = vector.load %arg6[%c0_12, %c0_13] : memref<8x128xf32, #tpu.memory_space<vmem>>, vector<8x128xf32>
    tpu.vector_store %arg6[%c0_12, %c0_13], %19 {strides = array<i32>} : memref<8x128xf32, #tpu.memory_space<vmem>>, vector<8x128xf32>,
    return
  }
  func.func @transform_0(%arg0: i32) -> (i32, i32) {
    %c0_i32 = arith.constant 0 : i32
    %c0_i32_0 = arith.constant 0 : i32
    return %arg0, %c0_i32 : i32, i32
  }
  func.func @transform_1(%arg0: i32) -> (i32, i32) {
    %c0_i32 = arith.constant 0 : i32
    %c0_i32_0 = arith.constant 0 : i32
    %c0_i32_1 = arith.constant 0 : i32
    return %c0_i32, %c0_i32_0 : i32, i32
  }
  func.func @transform_2(%arg0: i32) -> (i32, i32) {
    %c0_i32 = arith.constant 0 : i32
    %c0_i32_0 = arith.constant 0 : i32
    %c0_i32_1 = arith.constant 0 : i32
    return %c0_i32, %c0_i32_0 : i32, i32
  }
  func.func @transform_3(%arg0: i32) -> (i32, i32) {
    %c0_i32 = arith.constant 0 : i32
    %c0_i32_0 = arith.constant 0 : i32
    %c0_i32_1 = arith.constant 0 : i32
    return %c0_i32, %c0_i32_0 : i32, i32
  }
  func.func @transform_4(%arg0: i32) -> (i32, i32) {
    %c0_i32 = arith.constant 0 : i32
    %c0_i32_0 = arith.constant 0 : i32
    %c0_i32_1 = arith.constant 0 : i32
    return %c0_i32, %c0_i32_0 : i32, i32
  }
  func.func @transform_5(%arg0: i32) -> (i32, i32) {
    %c0_i32 = arith.constant 0 : i32
    %c0_i32_0 = arith.constant 0 : i32
    return %c0_i32, %arg0 : i32, i32
  }
}

</mosaic_0001>

<bundles_post_ra>
// kernel: color_decoder_forward.1
= control target key start
LH: loop header
LB: loop body
LE: loop exit
PB: predicated region body
PF: predicated region fallthrough
CT: control target
= control target key end

     0   :  { %s528_s18 = smov 0   ;;  %s602_s0 = inlined_call_operand.vmem [shape: f32[256,16], index: 0, kind: input, shape index: {}]   ;;  %s603_s1 = inlined_call_operand.vmem [shape: bf16[32,16], index: 1, kind: input, shape index: {}]   ;;  %s604_s2 = inlined_call_operand.vmem [shape: f32[32,1], index: 2, kind: input, shape index: {}]   ;;  %s605_s3 = inlined_call_operand.vmem [shape: bf16[8,32], index: 3, kind: input, shape index: {}]   ;;  %s606_s4 = inlined_call_operand.vmem [shape: f32[8,1], index: 4, kind: input, shape index: {}]   ;;  %s607_s5 = inlined_call_operand.vmem [shape: f32[8,256], index: 5, kind: output, shape index: {}]  }
   0x1 LB: > { %s534_s19 = sadd.s32 4294967295, %s495_s18   ;;  %p445_p0 = scmp.ge.s32.totalorder %s495_s18, 1  ;;  %s495_s18 = sphi %s528_s18, %s15_s18  }
   0x2   : > { %p188_p1 = scmp.lt.s32.totalorder %s495_s18, 3 }
   0x4   : > { %p189_p2 = pnand %p445_p0, %p188_p1 }
   0x5   : > { %s446_s20 = sshll.u32 (!%p189_p2), %s534_s19, 4  ;;  %p221_p4 = scmp.lt.s32.totalorder (!%p189_p2), %s534_s19, 1 }
   0x6   : > { %192 = sbr.rel (%p189_p2) target bundleno = 391 (0x187), region = 40  ;;  %p216_p3 = scmp.lt.s32.totalorder (!%p189_p2), %s446_s20, 31 }
   0xb   : > { %s609_s20 = smov (!%p216_p3, %s446_s20), 31  ;;  %vm288_vm0 = vcmask 130048   ;;  %v256_v22 = vld [vmem:[%s604_s2 + $0x10] sm:$0xff]  ;;  %v254_v23 = vld [vmem:[%s604_s2] sm:$0xff]  ;;  %v497_v25 = vmov 0   ;;  %v257_v29 = vld [vmem:[%s604_s2 + $0x18] sm:$0xff] }
   0xc   : > { %s447_s21 = sshll.u32 %s609_s20, 3  ;;  %482 = vset.pattern.permute.xlu0 %v497_v25  ;;  %483 = vset.pattern.permute.xlu1 %v497_v25  ;;  %v255_v30 = vld [vmem:[%s604_s2 + $0x8] sm:$0xff]  ;;  %v463_v38 = vld [vmem:[%s603_s1] sm:$0xff]  ;;  %vm351_vm1 = vcmask 261120   ;;  %s611_s19 = smov (!%p221_p4, %s534_s19), 1 }
   0xd   : > { %s542_s24 = scalar_lea.vmem %s602_s0, %s447_s21  ;;  %270 = vperm.xlu0 %482, %v256_v22   ;;  %260 = vperm.xlu1 %483, %v254_v23   ;;  %v464_v37 = vld [vmem:[%s603_s1 + $0x8] sm:$0xff]  ;;  %v345_v39 = vld [vmem:[%s606_s4] sm:$0xff]  ;;  %s448_s16 = sshll.u32 %s611_s19, 3 }
   0xe   : > { %v244_v0 = vld [vmem:[%s542_s24 + $0x70] sm:$0xff]  ;;  %v245_v1 = vld [vmem:[%s542_s24 + $0x78] sm:$0xff]  ;;  %v242_v3 = vld [vmem:[%s542_s24 + $0x60] sm:$0xff]  ;;  %484 = vset.pattern.permute.xlu2 %v497_v25  ;;  %s224_s21 = scalar_lea.vmem %s607_s5, %s448_s16 }
   0xf   : > { %v253_v2 = vpack.c.bf16 %v245_v1, %v244_v0  ;;  %v243_v4 = vld [vmem:[%s542_s24 + $0x68] sm:$0xff]  ;;  %v240_v8 = vld [vmem:[%s542_s24 + $0x50] sm:$0xff]  ;;  %v241_v9 = vld [vmem:[%s542_s24 + $0x58] sm:$0xff]  ;;  %348 = vperm.xlu2 %484, %v345_v39  }
  0x10   : > { %v252_v6 = vpack.c.bf16 %v243_v4, %v242_v3  ;;  %v251_v10 = vpack.c.bf16 %v241_v9, %v240_v8  ;;  %v238_v12 = vld [vmem:[%s542_s24 + $0x40] sm:$0xff]  ;;  %v239_v13 = vld [vmem:[%s542_s24 + $0x48] sm:$0xff]  ;;  %v236_v16 = vld [vmem:[%s542_s24 + $0x30] sm:$0xff] }
  0x11   : > { %v317_v5 = vsel %vm288_vm0, %v253_v2, 0  ;;  %v250_v14 = vpack.c.bf16 %v239_v13, %v238_v12  ;;  %v237_v17 = vld [vmem:[%s542_s24 + $0x38] sm:$0xff]  ;;  %v234_v20 = vld [vmem:[%s542_s24 + $0x20] sm:$0xff]  ;;  %v235_v21 = vld [vmem:[%s542_s24 + $0x28] sm:$0xff] }
  0x12   : > { %465 = vmatpush.bf16.xpose.msra.mxu2 %v317_v5  ;;  %319 = vmatpush.bf16.xpose.msra.mxu0 %v317_v5  ;;  %v314_v7 = vsel %vm288_vm0, %v252_v6, 0  ;;  %v311_v11 = vsel %vm288_vm0, %v251_v10, 0  ;;  %v249_v18 = vpack.c.bf16 %v237_v17, %v236_v16  ;;  %v248_v24 = vpack.c.bf16 %v235_v21, %v234_v20  ;;  %v232_v27 = vld [vmem:[%s542_s24 + $0x10] sm:$0xff]  ;;  %v233_v28 = vld [vmem:[%s542_s24 + $0x18] sm:$0xff]  ;;  %v230_v33 = vld [vmem:[%s542_s24] sm:$0xff] }
  0x13   : > { %v308_v15 = vsel %vm288_vm0, %v250_v14, 0  ;;  %v247_v31 = vpack.c.bf16 %v233_v28, %v232_v27  ;;  %v231_v34 = vld [vmem:[%s542_s24 + $0x8] sm:$0xff]  ;;  %v342_v58 = vld [vmem:[%s605_s3] sm:$0xf] }
  0x14   : > { %v305_v19 = vsel %vm288_vm0, %v249_v18, 0  ;;  %v302_v26 = vsel %vm288_vm0, %v248_v24, 0  ;;  %v246_v35 = vpack.c.bf16 %v231_v34, %v230_v33 }
  0x15   : > { %275 = vperm.xlu0 %482, %v257_v29   ;;  %265 = vperm.xlu1 %483, %v255_v30   ;;  %v299_v32 = vsel %vm288_vm0, %v247_v31, 0 }
  0x16   : > { %v296_v36 = vsel %vm288_vm0, %v246_v35, 0 }
  0x1a   : > { %466 = vmatpush.bf16.xpose.msra.mxu2 %v314_v7  ;;  %320 = vmatpush.bf16.xpose.msra.mxu0 %v314_v7 }
  0x22   : > { %467 = vmatpush.bf16.xpose.msra.mxu2 %v311_v11  ;;  %321 = vmatpush.bf16.xpose.msra.mxu0 %v311_v11 }
  0x2a   : > { %468 = vmatpush.bf16.xpose.msra.mxu2 %v308_v15  ;;  %322 = vmatpush.bf16.xpose.msra.mxu0 %v308_v15 }
  0x32   : > { %469 = vmatpush.bf16.xpose.msra.mxu2 %v305_v19  ;;  %323 = vmatpush.bf16.xpose.msra.mxu0 %v305_v19 }
  0x3a   : > { %470 = vmatpush.bf16.xpose.msra.mxu2 %v302_v26  ;;  %324 = vmatpush.bf16.xpose.msra.mxu0 %v302_v26 }
  0x42   : > { %471 = vmatpush.bf16.xpose.msra.mxu2 %v299_v32  ;;  %325 = vmatpush.bf16.xpose.msra.mxu0 %v299_v32 }
  0x4a   : > { %472 = vmatpush.bf16.xpose.msra.mxu2 %v296_v36  ;;  %326 = vmatpush.bf16.xpose.msra.mxu0 %v296_v36 }
  0x51   : > { %458 = vmatmul.msk.bf16.vlgmr.msra.gmra.mxu2 %vm288_vm0, %v464_v37  ;;  %457 = vmatmul.msk.bf16.vlgmr.msra.gmra.mxu0 %vm288_vm0, %v463_v38 }
  0x69   : > { %v349_v59 = vpop.permute.xlu2 %348 }
  0x7f   : > { %v261_v40 = vpop.permute.xlu1 %260  ;;  %v271_v42 = vpop.permute.xlu0 %270 }
  0x87   : > { %v266_v44 = vpop.permute.xlu1 %265  ;;  %v276_v47 = vpop.permute.xlu0 %275 }
  0xce   : > { %v328_v41 = vpop.f32.mrf.mxu0 }
  0xcf   : > { %v329_v49 = vadd.f32 %v328_v41, %v261_v40 }
  0xd1   : > { %v338_v54 = vmax.f32 %v329_v49, 0.0 }
  0xd4   : > { %v333_v43 = vpop.f32.mrf.mxu2 }
  0xd5   : > { %v334_v46 = vadd.f32 %v333_v43, %v271_v42 }
  0xd6   : > { %v330_v45 = vpop.f32.mrf.mxu0 }
  0xd7   : > { %v331_v50 = vadd.f32 %v330_v45, %v266_v44  ;;  %v340_v52 = vmax.f32 %v334_v46, 0.0 }
  0xd9   : > { %v339_v55 = vmax.f32 %v331_v50, 0.0 }
  0xdb   : > { %v343_v57 = vpack.c.bf16 %v339_v55, %v338_v54 }
  0xdc   : > { %v335_v48 = vpop.f32.mrf.mxu2 }
  0xdd   : > { %v336_v51 = vadd.f32 %v335_v48, %v276_v47 }
  0xdf   : > { %v341_v53 = vmax.f32 %v336_v51, 0.0 }
  0xe1   : > { %v344_v56 = vpack.c.bf16 %v341_v53, %v340_v52 }
  0xe3   : > { %361 = vmatpush.bf16.msra.mxu1 %v344_v56 }
  0xe7   : > { %362 = vmatpush.bf16.msra.mxu1 %v343_v57 }
  0xea   : > { %459 = vmatmul.msk.bf16.vlgmr.msra.gmra.mxu1 %vm351_vm1, %v342_v58 }
 0x167   : > { %v364_v60 = vpop.f32.mrf.mxu1 }
 0x168   : > { %v365_v61 = vadd.f32 %v364_v60, %v349_v59 }
 0x16a   : > { %v460_v62 = vmul.f32 -1.442695, %v365_v61 }
 0x16c   : > { %485 = vpow2.f32 %v460_v62 }
 0x16f   : > { %v366_v63 = vpop.f32.mrf.mxu1 }
 0x172   : > { %v486_v0 = vpop.eup %485 }
 0x173   : > { %v371_v1 = vadd.f32 1.0, %v486_v0 }
 0x175   : > { %487 = vrcp.f32 %v371_v1  ;;  %v383_v5 = vand.u32 2147483648, %v371_v1  ;;  %v381_v7 = vand.u32 2147483647, %v371_v1  ;;  %vm377_vm3 = vweird.f32 %v371_v1 }
 0x177   : > { %v384_v9 = vor.u32 1.1754944e-38, %v383_v5  ;;  %vm382_vm5 = vcmp.eq.f32.partialorder %v381_v7, 8.507059e+37 }
 0x17b   : > { %v488_v2 = vpop.eup %487 }
 0x17c   : > { %v373_v3 = vmul.f32 %v488_v2, %v371_v1  ;;  %vm378_vm2 = vweird.f32 %v488_v2 }
 0x17d   : > { %vm379_vm4 = vmor %vm377_vm3, %vm378_vm2 }
 0x17e   : > { %v374_v4 = vsub.f32 1.0, %v373_v3 }
 0x180   : > { %v375_v6 = vmul.f32 %v488_v2, %v374_v4 }
 0x182   : > { %v376_v8 = vadd.f32 %v488_v2, %v375_v6 }
 0x184   : > { %v380_v10 = vsel %vm379_vm4, %v488_v2, %v376_v8 }
 0x185   : > { %v385_v11 = vsel %vm382_vm5, %v384_v9, %v380_v10 }
 0x186   : > { %387 = vst [vmem:[%s224_s21] sm:$0xff] %v385_v11 }
 0x187 PF: > { %s15_s18 = sadd.s32 1, %s495_s18  }
 0x188   : > { %p12_p5 = scmp.ge.s32.totalorder %s15_s18, 4  }
 0x18a   :  { %14 = sbr.rel (!%p12_p5) target bundleno = 1 (0x1), region = 70 }

</bundles_post_ra>
